<compile_context>
chip_gen: v5e
topology: v5e:2x2
jax: 0.10.0
libtpu: 0.0.40
codegen_flags: <defaults>
</compile_context>

<pallas_src>
import jax
import jax.numpy as jnp
from jax.experimental import pallas as pl
from jax.experimental.pallas import tpu as pltpu


HP = 128          # padded packed hidden width / output slab width (lane-dense)
BIAS_ROWS = 8     # each bias stored as an 8-row tile (row 0 holds the bias, rest zero)
TILE_B = 512      # max rows per grid step


def _round_up(n, m):
    return ((n + m - 1) // m) * m


# ----------------------------- Pallas kernel ---------------------------------

def _make_kernel(obs_pad):
    # slab row offsets (all multiples of 8 -> static, tile-aligned views)
    r_w1 = 0
    r_b1 = r_w1 + obs_pad
    r_w2 = r_b1 + BIAS_ROWS
    r_b2 = r_w2 + HP
    r_w3 = r_b2 + BIAS_ROWS
    r_b3 = r_w3 + HP

    def kernel(x_ref, p_ref, o_ref):
        x = x_ref[...]
        w1 = p_ref[r_w1:r_w1 + obs_pad, :]
        b1 = p_ref[r_b1:r_b1 + BIAS_ROWS, :][0:1, :]
        h1 = jnp.tanh(jnp.dot(x, w1, preferred_element_type=jnp.float32) + b1)

        w2 = p_ref[r_w2:r_w2 + HP, :]
        b2 = p_ref[r_b2:r_b2 + BIAS_ROWS, :][0:1, :]
        h2 = jnp.tanh(jnp.dot(h1, w2, preferred_element_type=jnp.float32) + b2)

        w3 = p_ref[r_w3:r_w3 + HP, :]
        b3 = p_ref[r_b3:r_b3 + BIAS_ROWS, :][0:1, :]
        out = jnp.dot(h2, w3, preferred_element_type=jnp.float32) + b3
        o_ref[...] = out.astype(o_ref.dtype)

    return kernel


@jax.jit
def _fused_forward(x, slab):
    """Run the packed 3-net MLP on all rows of x.

    x:    [B, obs_pad] f32 (rows may be batch, or flattened rollout T*B)
    slab: [obs_pad + 2*128 + 3*8, 128] f32 packed parameter slab
    returns [B, 128] lane-dense output slab.
    """
    B, obs_pad = x.shape
    assert slab.shape == (obs_pad + 2 * HP + 3 * BIAS_ROWS, HP)

    tb = min(TILE_B, _round_up(B, 8))        # large row blocks; multiple of 8
    Bp = _round_up(B, tb)
    if Bp != B:
        x = jnp.pad(x, ((0, Bp - B), (0, 0)))
    grid = (Bp // tb,)

    flops = 2 * Bp * (obs_pad * HP + HP * HP + HP * HP)
    transcendentals = Bp * 2 * HP
    bytes_accessed = 4 * (Bp * obs_pad + int(slab.size) + Bp * HP)

    out = pl.pallas_call(
        _make_kernel(obs_pad),
        out_shape=jax.ShapeDtypeStruct((Bp, HP), jnp.float32),
        grid_spec=pltpu.PrefetchScalarGridSpec(
            num_scalar_prefetch=0,
            grid=grid,
            in_specs=[
                pl.BlockSpec((tb, obs_pad), lambda i: (i, 0)),   # per-step row block
                pl.BlockSpec(slab.shape, lambda i: (0, 0)),      # VMEM-resident params
            ],
            out_specs=pl.BlockSpec((tb, HP), lambda i: (i, 0)),  # lane-dense output slab
        ),
        compiler_params=pltpu.CompilerParams(dimension_semantics=("parallel",)),
        cost_estimate=pl.CostEstimate(
            flops=flops, transcendentals=transcendentals, bytes_accessed=bytes_accessed),
    )(x, slab)
    return out[:B]


# --------------------------- parameter utilities -----------------------------

def init_linear(key, in_f, out_f):
    """PyTorch nn.Linear default init: U(-1/sqrt(in_f), 1/sqrt(in_f)) for W and b."""
    k = 1.0 / (in_f ** 0.5)
    wkey, bkey = jax.random.split(key)
    w = jax.random.uniform(wkey, (in_f, out_f), jnp.float32, -k, k)
    b = jax.random.uniform(bkey, (1, out_f), jnp.float32, -k, k)
    return w, b


def init_mlp(key, dims):
    keys = jax.random.split(key, len(dims) - 1)
    return [init_linear(k, dims[i], dims[i + 1]) for i, k in enumerate(keys)]


def pack_param_slab(nets, obs_dim):
    """Pack N 3-layer MLPs (shared input, same hidden size) into one [R, 128] f32 slab.

    Row layout (every segment 8-row aligned; all columns lane-dense 128):
      [0 : obs_pad]      W1   (nets side-by-side in columns)
      [+8]               b1   (row 0)
      [+128]             W2   (block-diagonal)
      [+8]               b2
      [+128]             W3   (rows blocked per net, outputs packed into columns)
      [+8]               b3
    Padded rows/columns are zero, so padded lanes stay exactly zero through tanh.
    Returns (slab, out_slices, obs_pad) with out_slices[i] = (col, width) of net i.
    """
    h = nets[0][0][0].shape[1]
    n = len(nets)
    assert n * h <= HP, "packed hidden width must stay <= 128 (single MXU tile on v5e)"
    obs_pad = _round_up(obs_dim, 8)

    out_slices, col = [], 0
    for p in nets:
        od = p[2][0].shape[1]
        out_slices.append((col, od))
        col += od
    assert col <= HP

    w1 = jnp.zeros((obs_pad, HP), jnp.float32); b1 = jnp.zeros((1, HP), jnp.float32)
    w2 = jnp.zeros((HP, HP), jnp.float32);      b2 = jnp.zeros((1, HP), jnp.float32)
    w3 = jnp.zeros((HP, HP), jnp.float32);      b3 = jnp.zeros((1, HP), jnp.float32)
    for i, ((w1i, b1i), (w2i, b2i), (w3i, b3i)) in enumerate(nets):
        c0 = i * h
        oc, od = out_slices[i]
        w1 = w1.at[:obs_dim, c0:c0 + h].set(w1i)
        b1 = b1.at[:, c0:c0 + h].set(b1i)
        w2 = w2.at[c0:c0 + h, c0:c0 + h].set(w2i)
        b2 = b2.at[:, c0:c0 + h].set(b2i)
        w3 = w3.at[c0:c0 + h, oc:oc + od].set(w3i)
        b3 = b3.at[:, oc:oc + od].set(b3i)

    def bias_tile(b):
        return jnp.concatenate([b, jnp.zeros((BIAS_ROWS - 1, HP), jnp.float32)], axis=0)

    slab = jnp.concatenate(
        [w1, bias_tile(b1), w2, bias_tile(b2), w3, bias_tile(b3)], axis=0)
    return slab, out_slices, obs_pad


# ----------------------------- model wrapper ---------------------------------

class CombinedSeparateModelPallas:
    """Mirrors CombinedSeperateModel.forward (critic_type == 'history')."""

    def __init__(self, key, obs_dim, action_dim, hidden=32):
        ka, kc, kt = jax.random.split(key, 3)
        self.obs_dim = obs_dim
        self.action_dim = action_dim
        self.actor_params = init_mlp(ka, (obs_dim, hidden, hidden, action_dim))
        self.critic_params = init_mlp(kc, (obs_dim, hidden, hidden, 1))
        self.target_params = init_mlp(kt, (obs_dim, hidden, hidden, 1))
        self._repack()

    def _repack(self):
        # Single 3-net bundle; MUST be re-run after any parameter update
        # (training step or target-network sync), otherwise the slab goes stale.
        self._slab, slices, self._obs_pad = pack_param_slab(
            [self.actor_params, self.critic_params, self.target_params], self.obs_dim)
        (self._a_col, self._a_w), (self._c_col, self._c_w), (self._t_col, self._t_w) = slices

    def update_target_net(self):
        self.target_params = [(w, b) for (w, b) in self.critic_params]
        self._repack()

    def _run(self, traces):
        x = jnp.asarray(traces, jnp.float32)
        if x.shape[-1] != self._obs_pad:
            x = jnp.pad(x, ((0, 0), (0, self._obs_pad - x.shape[-1])))
        return _fused_forward(x, self._slab)

    def forward(self, traces, states=None, action_only=False, target_val=False):
        out = self._run(traces)  # one kernel computes actor + critic + target-critic
        a = out[:, self._a_col:self._a_col + self._a_w]
        if action_only:
            return a
        # critic_type == 'history' -> critic input is `traces` (states unused)
        if target_val:
            return a, out[:, self._t_col:self._t_col + self._t_w]
        return a, out[:, self._c_col:self._c_col + self._c_w]


# --------------------------------- main ---------------------------------------

if __name__ == "__main__":
    key = jax.random.PRNGKey(0)
    pkey, xkey, xkey2 = jax.random.split(key, 3)

    batch, obs_dim, hidden, action_dim = 8, 32, 32, 4
    model = CombinedSeparateModelPallas(pkey, obs_dim, action_dim, hidden)
    traces = jax.random.normal(xkey, (batch, obs_dim), dtype=jnp.float32)

    a, v = model.forward(traces)
    a_only = model.forward(traces, action_only=True)
    a_t, v_t = model.forward(traces, target_val=True)
    jax.block_until_ready((a, v, a_only, a_t, v_t))

    # sanity checks against a pure-JAX reference of the unpacked networks
    def ref_mlp(x, params):
        (w1, b1), (w2, b2), (w3, b3) = params
        h = jnp.tanh(x @ w1 + b1)
        h = jnp.tanh(h @ w2 + b2)
        return h @ w3 + b3

    assert a.shape == (batch, action_dim) and v.shape == (batch, 1)
    assert jnp.allclose(a, ref_mlp(traces, model.actor_params), atol=1e-5)
    assert jnp.allclose(v, ref_mlp(traces, model.critic_params), atol=1e-5)
    assert jnp.allclose(a_only, a, atol=1e-6)
    assert jnp.allclose(a_t, a, atol=1e-6)
    assert jnp.allclose(v_t, ref_mlp(traces, model.target_params), atol=1e-5)

    # exercise the gridded / batch-padded path (rollout-sized row count, multiple grid steps)
    big = jax.random.normal(xkey2, (1030, obs_dim), dtype=jnp.float32)
    a_big, v_big = model.forward(big)
    jax.block_until_ready((a_big, v_big))
    assert a_big.shape == (1030, action_dim) and v_big.shape == (1030, 1)
    assert jnp.allclose(a_big, ref_mlp(big, model.actor_params), atol=1e-5)
    assert jnp.allclose(v_big, ref_mlp(big, model.critic_params), atol=1e-5)

    print("KERNEL_OK")
</pallas_src>

<mosaic_0001>
module attributes {stable_mosaic.version = 11 : i64} {
  func.func @kernel(%arg0: i32, %arg1: memref<8x32xf32, #tpu.memory_space<vmem>>, %arg2: memref<312x128xf32, #tpu.memory_space<vmem>>, %arg3: memref<8x128xf32, #tpu.memory_space<vmem>>) attributes {dimension_semantics = [#tpu.dimension_semantics<parallel>], iteration_bounds = array<i64: 1>, scalar_prefetch = 0 : i64, scratch_operands = 0 : i64, tpu.core_type = #tpu.core_type<tc>, window_params = [{transform_indices = @transform_0, window_bounds = array<i64: 8, 32>}, {pipeline_mode = #tpu.pipeline_mode<synchronous>, transform_indices = @transform_1, window_bounds = array<i64: 312, 128>}, {transform_indices = @transform_2, window_bounds = array<i64: 8, 128>}]} {
    %c0 = arith.constant 0 : index
    %c0_0 = arith.constant 0 : index
    %0 = vector.load %arg1[%c0, %c0_0] : memref<8x32xf32, #tpu.memory_space<vmem>>, vector<8x32xf32>
    %c0_1 = arith.constant 0 : index
    %c0_2 = arith.constant 0 : index
    %1 = vector.load %arg2[%c0_1, %c0_2] : memref<312x128xf32, #tpu.memory_space<vmem>>, vector<32x128xf32>
    %c32 = arith.constant 32 : index
    %c0_3 = arith.constant 0 : index
    %2 = vector.load %arg2[%c32, %c0_3] : memref<312x128xf32, #tpu.memory_space<vmem>>, vector<8x128xf32>
    %3 = vector.extract_strided_slice %2 {offsets = [0, 0], sizes = [1, 128], strides = [1, 1]} : vector<8x128xf32> to vector<1x128xf32>
    %cst = arith.constant dense<0.000000e+00> : vector<8x128xf32>
    %4 = tpu.matmul %0, %1, %cst {dimension_numbers = #tpu.dot_dimension_numbers<[1], [0], [0], [1], [0, 0, 1, 1], [], []>} : vector<8x32xf32>, vector<32x128xf32>, vector<8x128xf32> -> vector<8x128xf32>
    %5 = vector.broadcast %3 : vector<1x128xf32> to vector<8x128xf32>
    %6 = arith.addf %4, %5 : vector<8x128xf32>
    %7 = math.tanh %6 : vector<8x128xf32>
    %c40 = arith.constant 40 : index
    %c0_4 = arith.constant 0 : index
    %8 = vector.load %arg2[%c40, %c0_4] : memref<312x128xf32, #tpu.memory_space<vmem>>, vector<128x128xf32>
    %c168 = arith.constant 168 : index
    %c0_5 = arith.constant 0 : index
    %9 = vector.load %arg2[%c168, %c0_5] : memref<312x128xf32, #tpu.memory_space<vmem>>, vector<8x128xf32>
    %10 = vector.extract_strided_slice %9 {offsets = [0, 0], sizes = [1, 128], strides = [1, 1]} : vector<8x128xf32> to vector<1x128xf32>
    %cst_6 = arith.constant dense<0.000000e+00> : vector<8x128xf32>
    %11 = tpu.matmul %7, %8, %cst_6 {dimension_numbers = #tpu.dot_dimension_numbers<[1], [0], [0], [1], [0, 0, 1, 1], [], []>} : vector<8x128xf32>, vector<128x128xf32>, vector<8x128xf32> -> vector<8x128xf32>
    %12 = vector.broadcast %10 : vector<1x128xf32> to vector<8x128xf32>
    %13 = arith.addf %11, %12 : vector<8x128xf32>
    %14 = math.tanh %13 : vector<8x128xf32>
    %c176 = arith.constant 176 : index
    %c0_7 = arith.constant 0 : index
    %15 = vector.load %arg2[%c176, %c0_7] : memref<312x128xf32, #tpu.memory_space<vmem>>, vector<128x128xf32>
    %c304 = arith.constant 304 : index
    %c0_8 = arith.constant 0 : index
    %16 = vector.load %arg2[%c304, %c0_8] : memref<312x128xf32, #tpu.memory_space<vmem>>, vector<8x128xf32>
    %17 = vector.extract_strided_slice %16 {offsets = [0, 0], sizes = [1, 128], strides = [1, 1]} : vector<8x128xf32> to vector<1x128xf32>
    %cst_9 = arith.constant dense<0.000000e+00> : vector<8x128xf32>
    %18 = tpu.matmul %14, %15, %cst_9 {dimension_numbers = #tpu.dot_dimension_numbers<[1], [0], [0], [1], [0, 0, 1, 1], [], []>} : vector<8x128xf32>, vector<128x128xf32>, vector<8x128xf32> -> vector<8x128xf32>
    %19 = vector.broadcast %17 : vector<1x128xf32> to vector<8x128xf32>
    %20 = arith.addf %18, %19 : vector<8x128xf32>
    %c0_10 = arith.constant 0 : index
    %c0_11 = arith.constant 0 : index
    %21 = vector.load %arg3[%c0_10, %c0_11] : memref<8x128xf32, #tpu.memory_space<vmem>>, vector<8x128xf32>
    tpu.vector_store %arg3[%c0_10, %c0_11], %20 {strides = array<i32>} : memref<8x128xf32, #tpu.memory_space<vmem>>, vector<8x128xf32>,
    return
  }
  func.func @transform_0(%arg0: i32) -> (i32, i32) {
    %c0_i32 = arith.constant 0 : i32
    %c0_i32_0 = arith.constant 0 : i32
    return %arg0, %c0_i32 : i32, i32
  }
  func.func @transform_1(%arg0: i32) -> (i32, i32) {
    %c0_i32 = arith.constant 0 : i32
    %c0_i32_0 = arith.constant 0 : i32
    %c0_i32_1 = arith.constant 0 : i32
    return %c0_i32, %c0_i32_0 : i32, i32
  }
  func.func @transform_2(%arg0: i32) -> (i32, i32) {
    %c0_i32 = arith.constant 0 : i32
    %c0_i32_0 = arith.constant 0 : i32
    return %arg0, %c0_i32 : i32, i32
  }
}

</mosaic_0001>

<bundles_post_ra>
// kernel: _fused_forward.1
= control target key start
LH: loop header
LB: loop body
LE: loop exit
PB: predicated region body
PF: predicated region fallthrough
CT: control target
= control target key end

     0   :  { %7 = vsyncpa [#allocation3], 0  ;;  %s287_s0 = inlined_call_operand.hbm [shape: f32[8,32], index: 0, kind: input, shape index: {}]   ;;  %s288_s1 = inlined_call_operand.hbm [shape: f32[312,128], index: 1, kind: input, shape index: {}]   ;;  %s289_s2 = inlined_call_operand.hbm [shape: f32[8,128], index: 2, kind: output, shape index: {}]  }
   0x1   :  { %8 = vsyncpa [#allocation6], 0 }
   0x2   :  { %9 = vsyncpa [#allocation4], 0  ;;  %s15_s11 = sshll.u32 %s287_s0, 4  ;;  %s258_s12 = smov [#allocation2]   ;;  %s16_s11 = int_to_ptr.hbm [resolvable:$true] %s15_s11 }
   0x3   :  { %s17_s13 = sshll.u32 %s258_s12, 4  ;;  %s25_s16 = sshll.u32 %s288_s1, 4  ;;  %s18_s13 = int_to_ptr.vmem [resolvable:$true] %s17_s13  ;;  %s26_s16 = int_to_ptr.hbm [resolvable:$true] %s25_s16 }
   0x4   :  { %20 = dma.hbm_to_vmem [thread:$0]  %s16_s11, 128, %s18_s13, [#allocation3]  }
   0x5   :  { %s259_s17 = smov [#allocation5]   ;;  %s260_s19 = smov 128  }
   0x6   :  { %s27_s18 = sshll.u32 %s259_s17, 4  ;;  %s261_s20 = smov 8   ;;  %s28_s18 = int_to_ptr.vmem [resolvable:$true] %s27_s18 }
   0x7   :  { %33 = dma.hbm_to_vmem [thread:$0]  %s26_s16, 4992, %s28_s18, [#allocation6], %s260_s19, %s260_s19, %s261_s20  }
   0x8   :  { %252 = dma.done.wait [#allocation3], 128  }
   0x9   :  { %253 = vsyncadd [#allocation3], 4294967168 }
   0xa   :  { %254 = dma.done.wait [#allocation6], 4992  }
   0xb   :  { %255 = vsyncadd [#allocation6], 4294962304  ;;  %v46_v0 = vld [vmem:[#allocation5 + $0x18] sm:$0xff]  ;;  %v45_v1 = vld [vmem:[#allocation5 + $0x10] sm:$0xff]  ;;  %vm49_vm0 = vcmask 261120   ;;  %s262_s0 = smov [#allocation7]  }
   0xc   :  { %65 = vmatpush.msra.mxu0 %v46_v0  ;;  %v89_v2 = vld [vmem:[#allocation5 + $0xa0] sm:$0xff]  ;;  %v44_v3 = vld [vmem:[#allocation5 + $0x8] sm:$0xff]  ;;  %v88_v4 = vld [vmem:[#allocation5 + $0x98] sm:$0xff]  ;;  %s157_s1 = sshll.u32 %s262_s0, 4  ;;  %s159_s23 = sshll.u32 %s289_s2, 4  ;;  %s158_s1 = int_to_ptr.vmem [resolvable:$true] %s157_s1  ;;  %s160_s23 = int_to_ptr.hbm [resolvable:$true] %s159_s23 }
   0xd   :  { %92 = vmatpush.msra.mxu1 %v89_v2  ;;  %v87_v5 = vld [vmem:[#allocation5 + $0x90] sm:$0xff]  ;;  %v43_v6 = vld [vmem:[#allocation5] sm:$0xff]  ;;  %v42_v7 = vld [vmem:[#allocation2] sm:$0xff] }
   0xe   :  { %66 = vmatpush.msra.mxu0 %v45_v1  ;;  %v86_v8 = vld [vmem:[#allocation5 + $0x88] sm:$0xff]  ;;  %v85_v9 = vld [vmem:[#allocation5 + $0x80] sm:$0xff]  ;;  %v84_v10 = vld [vmem:[#allocation5 + $0x78] sm:$0xff] }
   0xf   :  { %93 = vmatpush.msra.mxu1 %v88_v4  ;;  %v83_v11 = vld [vmem:[#allocation5 + $0x70] sm:$0xff]  ;;  %v82_v12 = vld [vmem:[#allocation5 + $0x68] sm:$0xff]  ;;  %v81_v13 = vld [vmem:[#allocation5 + $0x60] sm:$0xff] }
  0x10   :  { %67 = vmatpush.msra.mxu0 %v44_v3  ;;  %v80_v14 = vld [vmem:[#allocation5 + $0x58] sm:$0xff]  ;;  %v79_v15 = vld [vmem:[#allocation5 + $0x50] sm:$0xff]  ;;  %v78_v16 = vld [vmem:[#allocation5 + $0x48] sm:$0xff] }
  0x11   :  { %94 = vmatpush.msra.mxu1 %v87_v5  ;;  %v77_v17 = vld [vmem:[#allocation5 + $0x40] sm:$0xff]  ;;  %v76_v18 = vld [vmem:[#allocation5 + $0x38] sm:$0xff]  ;;  %v75_v19 = vld [vmem:[#allocation5 + $0x30] sm:$0xff] }
  0x12   :  { %68 = vmatpush.msra.mxu0 %v43_v6  ;;  %v74_v20 = vld [vmem:[#allocation5 + $0x28] sm:$0xff]  ;;  %v127_v22 = vld [vmem:[#allocation5 + $0x120] sm:$0xff]  ;;  %v126_v23 = vld [vmem:[#allocation5 + $0x118] sm:$0xff] }
  0x13   :  { %170 = vmatmul.msk.f32.vlgmr.msra.gmra.mxu0 %vm49_vm0, %v42_v7  ;;  %95 = vmatpush.msra.mxu1 %v86_v8  ;;  %v128_v21 = vld [vmem:[#allocation5 + $0x128] sm:$0xff]  ;;  %v125_v24 = vld [vmem:[#allocation5 + $0x110] sm:$0xff]  ;;  %v123_v26 = vld [vmem:[#allocation5 + $0x100] sm:$0xff] }
  0x14   :  { %131 = vmatpush.msra.mxu2 %v128_v21  ;;  %v124_v25 = vld [vmem:[#allocation5 + $0x108] sm:$0xff]  ;;  %v122_v27 = vld [vmem:[#allocation5 + $0xf8] sm:$0xff]  ;;  %v121_v28 = vld [vmem:[#allocation5 + $0xf0] sm:$0xff] }
  0x15   :  { %96 = vmatpush.msra.mxu1 %v85_v9  ;;  %v120_v29 = vld [vmem:[#allocation5 + $0xe8] sm:$0xff]  ;;  %v47_v30 = vld [vmem:[#allocation5 + $0x20] sm:$0xff]  ;;  %v118_v32 = vld [vmem:[#allocation5 + $0xd8] sm:$0xff] }
  0x16   :  { %132 = vmatpush.msra.mxu2 %v127_v22  ;;  %v119_v31 = vld [vmem:[#allocation5 + $0xe0] sm:$0xff]  ;;  %v48_v33 = vperm.slane %v47_v30, 0  ;;  %v117_v37 = vld [vmem:[#allocation5 + $0xd0] sm:$0xff]  ;;  %v116_v38 = vld [vmem:[#allocation5 + $0xc8] sm:$0xff] }
  0x17   :  { %97 = vmatpush.msra.mxu1 %v84_v10  ;;  %v115_v39 = vld [vmem:[#allocation5 + $0xc0] sm:$0xff]  ;;  %v114_v40 = vld [vmem:[#allocation5 + $0xb8] sm:$0xff]  ;;  %v113_v41 = vld [vmem:[#allocation5 + $0xb0] sm:$0xff] }
  0x18   :  { %133 = vmatpush.msra.mxu2 %v126_v23  ;;  %v90_v42 = vld [vmem:[#allocation5 + $0xa8] sm:$0xff]  ;;  %v129_v47 = vld [vmem:[#allocation5 + $0x130] sm:$0xff] }
  0x19   :  { %98 = vmatpush.msra.mxu1 %v83_v11  ;;  %v91_v43 = vperm.slane %v90_v42, 0  ;;  %v130_v48 = vperm.slane %v129_v47, 0 }
  0x1a   :  { %134 = vmatpush.msra.mxu2 %v125_v24 }
  0x1b   :  { %99 = vmatpush.msra.mxu1 %v82_v12 }
  0x1c   :  { %135 = vmatpush.msra.mxu2 %v124_v25 }
  0x1d   :  { %100 = vmatpush.msra.mxu1 %v81_v13 }
  0x1e   :  { %136 = vmatpush.msra.mxu2 %v123_v26 }
  0x1f   :  { %101 = vmatpush.msra.mxu1 %v80_v14 }
  0x20   :  { %137 = vmatpush.msra.mxu2 %v122_v27 }
  0x21   :  { %102 = vmatpush.msra.mxu1 %v79_v15 }
  0x22   :  { %138 = vmatpush.msra.mxu2 %v121_v28 }
  0x23   :  { %103 = vmatpush.msra.mxu1 %v78_v16 }
  0x24   :  { %139 = vmatpush.msra.mxu2 %v120_v29 }
  0x25   :  { %104 = vmatpush.msra.mxu1 %v77_v17 }
  0x26   :  { %140 = vmatpush.msra.mxu2 %v119_v31 }
  0x27   :  { %105 = vmatpush.msra.mxu1 %v76_v18 }
  0x28   :  { %141 = vmatpush.msra.mxu2 %v118_v32 }
  0x29   :  { %106 = vmatpush.msra.mxu1 %v75_v19 }
  0x2a   :  { %142 = vmatpush.msra.mxu2 %v117_v37 }
  0x2b   :  { %107 = vmatpush.msra.mxu1 %v74_v20 }
  0x2c   :  { %143 = vmatpush.msra.mxu2 %v116_v38 }
  0x2e   :  { %144 = vmatpush.msra.mxu2 %v115_v39 }
  0x30   :  { %145 = vmatpush.msra.mxu2 %v114_v40 }
  0x32   :  { %146 = vmatpush.msra.mxu2 %v113_v41 }
  0x90   :  { %v70_v34 = vpop.f32.mrf.mxu0 }
  0x91   :  { %v71_v35 = vadd.f32 %v70_v34, %v48_v33 }
  0x93   :  { %176 = vtanh.f32 %v71_v35 }
  0x99   :  { %v177_v36 = vpop.eup %176 }
  0x9a   :  { %108 = vmatmul.f32.vlgmr.msra.gmra.mxu1 %v177_v36 }
 0x117   :  { %v109_v44 = vpop.f32.mrf.mxu1 }
 0x118   :  { %v110_v45 = vadd.f32 %v109_v44, %v91_v43 }
 0x11a   :  { %178 = vtanh.f32 %v110_v45 }
 0x120   :  { %v179_v46 = vpop.eup %178 }
 0x121   :  { %147 = vmatmul.f32.vlgmr.msra.gmra.mxu2 %v179_v46 }
 0x1a4   :  { %v148_v49 = vpop.f32.mrf.mxu2 }
 0x1a5   :  { %v149_v50 = vadd.f32 %v148_v49, %v130_v48 }
 0x1a7   :  { %151 = vst [vmem:[#allocation7] sm:$0xff] %v149_v50 }
 0x1a8   :  { %162 = dma.vmem_to_hbm [thread:$0]  %s158_s1, 128, %s160_s23, [#allocation4]  }
 0x1a9   :  { %256 = dma.done.wait [#allocation4], 128  }
 0x1aa   :  { %257 = vsyncadd [#allocation4], 4294967168 }
 0x1ab   :  { %167 = vsyncpa [#allocation3], 1 }
 0x1ac   :  { %168 = vsyncpa [#allocation6], 1 }
 0x1ad   :  { %169 = vsyncpa [#allocation4], 1 }

</bundles_post_ra>
